<compile_context>
chip_gen: v6e
topology: v6e:2x2x1
jax: 0.10.0
libtpu: 0.0.40
codegen_flags: <defaults>
</compile_context>

<pallas_src>
import jax
import jax.numpy as jnp
from jax.experimental import pallas as pl
from jax.experimental.pallas import tpu as pltpu

IN_FEATS = 60 * 24        # 1440
K_PAD = 1536              # 12 * 128 (lane-aligned contraction dim)
H1 = 256
H2 = 64
OUT = 1
MAX_TM = 512              # rows per grid step for large batches


def mlp_kernel(x_ref, w1_ref, b1_ref, w2_ref, b2_ref, w3_ref, b3_ref, o_ref):
    # x_ref: (TM, K_PAD) bf16; weights bf16 (MXU), biases / w3 f32 (VPU path).
    x = x_ref[...]

    # fc1 + ReLU  (MXU, f32 accumulate)
    h1 = jnp.dot(x, w1_ref[...], preferred_element_type=jnp.float32) + b1_ref[...]
    h1 = jnp.maximum(h1, 0.0)

    # fc2 + ReLU  (MXU, f32 accumulate)
    h2 = jnp.dot(h1.astype(jnp.bfloat16), w2_ref[...],
                 preferred_element_type=jnp.float32) + b2_ref[...]
    h2 = jnp.maximum(h2, 0.0)

    # fc3 (N=1): VPU multiply + lane reduction instead of a wasteful MXU matmul.
    y = jnp.sum(h2 * w3_ref[...], axis=-1, keepdims=True) + b3_ref[...]

    o_ref[...] = y.astype(o_ref.dtype)


def mlp_forward(x, params):
    """x: (B, 60, 24) f32.  Returns (B, 1) f32."""
    w1, b1, w2, b2, w3, b3 = params
    B = x.shape[0]

    # nn.Flatten(), then zero-pad K 1440 -> 1536 (padded cols contribute 0).
    x_flat = x.reshape(B, IN_FEATS)
    x_flat = jnp.pad(x_flat, ((0, 0), (0, K_PAD - IN_FEATS)))

    # Choose a batch tile: whole (sublane-padded) batch if small, else 512 rows.
    B_pad = max(8, ((B + 7) // 8) * 8)
    if B_pad > MAX_TM:
        tm = MAX_TM
        B_pad = ((B_pad + tm - 1) // tm) * tm
    else:
        tm = B_pad
    if B_pad != B:
        x_flat = jnp.pad(x_flat, ((0, B_pad - B), (0, 0)))
    num_tiles = B_pad // tm

    # Prepare params: bf16 matmul operands (W1 zero-padded on K), f32 elementwise.
    w1p = jnp.pad(w1, ((0, K_PAD - IN_FEATS), (0, 0))).astype(jnp.bfloat16)
    w2p = w2.astype(jnp.bfloat16)
    w3t = w3.reshape(1, H2).astype(jnp.float32)      # (1, 64) for VPU broadcast
    b1p = b1.reshape(1, H1).astype(jnp.float32)
    b2p = b2.reshape(1, H2).astype(jnp.float32)
    b3p = b3.reshape(1, OUT).astype(jnp.float32)
    x_bf16 = x_flat.astype(jnp.bfloat16)

    const = lambda shape: pl.BlockSpec(shape, lambda i: tuple(0 for _ in shape))

    flops = 2 * B_pad * (K_PAD * H1 + H1 * H2 + H2 * OUT)
    bytes_accessed = (
        x_bf16.size * 2 + w1p.size * 2 + w2p.size * 2
        + (w3t.size + b1p.size + b2p.size + b3p.size) * 4
        + B_pad * OUT * 4
    )

    out = pl.pallas_call(
        mlp_kernel,
        out_shape=jax.ShapeDtypeStruct((B_pad, OUT), jnp.float32),
        grid=(num_tiles,),
        in_specs=[
            pl.BlockSpec((tm, K_PAD), lambda i: (i, 0)),   # x tile (streamed)
            const((K_PAD, H1)),                            # W1 (resident)
            const((1, H1)),                                # b1
            const((H1, H2)),                               # W2
            const((1, H2)),                                # b2
            const((1, H2)),                                # w3 (row vector)
            const((1, OUT)),                               # b3
        ],
        out_specs=pl.BlockSpec((tm, OUT), lambda i: (i, 0)),
        compiler_params=pltpu.CompilerParams(
            dimension_semantics=("parallel",)),
        cost_estimate=pl.CostEstimate(
            flops=flops, bytes_accessed=bytes_accessed, transcendentals=0),
    )(x_bf16, w1p, b1p, w2p, b2p, w3t, b3p)

    return out[:B]


def init_params(key):
    """Deterministic init matching nn.Linear shapes, stored as (in, out)."""
    ks = jax.random.split(key, 6)

    def uniform(k, shape, fan_in):
        bound = 1.0 / jnp.sqrt(fan_in)
        return jax.random.uniform(k, shape, jnp.float32, -bound, bound)

    w1 = uniform(ks[0], (IN_FEATS, H1), IN_FEATS)
    b1 = uniform(ks[1], (1, H1), IN_FEATS)
    w2 = uniform(ks[2], (H1, H2), H1)
    b2 = uniform(ks[3], (1, H2), H1)
    w3 = uniform(ks[4], (H2, OUT), H2)
    b3 = uniform(ks[5], (1, OUT), H2)
    return (w1, b1, w2, b2, w3, b3)


def mlp_reference(x, params):
    """Pure-JAX f32 reference of the PyTorch forward."""
    w1, b1, w2, b2, w3, b3 = params
    h = x.reshape(x.shape[0], -1)
    h = jnp.maximum(h @ w1 + b1, 0.0)
    h = jnp.maximum(h @ w2 + b2, 0.0)
    return h @ w3 + b3


if __name__ == "__main__":
    key = jax.random.PRNGKey(0)
    k_x, k_p = jax.random.split(key)

    B = 8
    x = jax.random.normal(k_x, (B, 60, 24), dtype=jnp.float32)
    params = init_params(k_p)

    out = mlp_forward(x, params)
    out = jax.block_until_ready(out)

    ref = mlp_reference(x, params)
    assert out.shape == (B, 1), out.shape
    # bf16 matmul inputs with f32 accumulation -> loosened tolerance vs f32 ref.
    assert jnp.allclose(out, ref, atol=3e-2, rtol=3e-2), "mismatch vs reference"

    print("KERNEL_OK")
</pallas_src>

<mosaic_0001>
module attributes {stable_mosaic.version = 11 : i64} {
  func.func @mlp_kernel(%arg0: i32, %arg1: memref<8x1536xbf16, #tpu.memory_space<vmem>>, %arg2: memref<1536x256xbf16, #tpu.memory_space<vmem>>, %arg3: memref<1x256xf32, #tpu.memory_space<vmem>>, %arg4: memref<256x64xbf16, #tpu.memory_space<vmem>>, %arg5: memref<1x64xf32, #tpu.memory_space<vmem>>, %arg6: memref<1x64xf32, #tpu.memory_space<vmem>>, %arg7: memref<1x1xf32, #tpu.memory_space<vmem>>, %arg8: memref<8x1xf32, #tpu.memory_space<vmem>>) attributes {dimension_semantics = [#tpu.dimension_semantics<parallel>], iteration_bounds = array<i64: 1>, scalar_prefetch = 0 : i64, scratch_operands = 0 : i64, tpu.core_type = #tpu.core_type<tc>, window_params = [{transform_indices = @transform_0, window_bounds = array<i64: 8, 1536>}, {pipeline_mode = #tpu.pipeline_mode<synchronous>, transform_indices = @transform_1, window_bounds = array<i64: 1536, 256>}, {pipeline_mode = #tpu.pipeline_mode<synchronous>, transform_indices = @transform_2, window_bounds = array<i64: 1, 256>}, {pipeline_mode = #tpu.pipeline_mode<synchronous>, transform_indices = @transform_3, window_bounds = array<i64: 256, 64>}, {pipeline_mode = #tpu.pipeline_mode<synchronous>, transform_indices = @transform_4, window_bounds = array<i64: 1, 64>}, {pipeline_mode = #tpu.pipeline_mode<synchronous>, transform_indices = @transform_5, window_bounds = array<i64: 1, 64>}, {pipeline_mode = #tpu.pipeline_mode<synchronous>, transform_indices = @transform_6, window_bounds = array<i64: 1, 1>}, {transform_indices = @transform_7, window_bounds = array<i64: 8, 1>}]} {
    %c0 = arith.constant 0 : index
    %c0_0 = arith.constant 0 : index
    %0 = vector.load %arg1[%c0, %c0_0] : memref<8x1536xbf16, #tpu.memory_space<vmem>>, vector<8x1536xbf16>
    %c0_1 = arith.constant 0 : index
    %c0_2 = arith.constant 0 : index
    %1 = vector.load %arg2[%c0_1, %c0_2] : memref<1536x256xbf16, #tpu.memory_space<vmem>>, vector<1536x256xbf16>
    %cst = arith.constant dense<0.000000e+00> : vector<8x256xf32>
    %2 = tpu.matmul %0, %1, %cst {dimension_numbers = #tpu.dot_dimension_numbers<[1], [0], [0], [1], [0, 0, 1, 1], [], []>} : vector<8x1536xbf16>, vector<1536x256xbf16>, vector<8x256xf32> -> vector<8x256xf32>
    %c0_3 = arith.constant 0 : index
    %c0_4 = arith.constant 0 : index
    %3 = vector.load %arg3[%c0_3, %c0_4] : memref<1x256xf32, #tpu.memory_space<vmem>>, vector<1x256xf32>
    %4 = vector.broadcast %3 : vector<1x256xf32> to vector<8x256xf32>
    %5 = arith.addf %2, %4 : vector<8x256xf32>
    %cst_5 = arith.constant 0.000000e+00 : f32
    %6 = vector.broadcast %cst_5 : f32 to vector<8x256xf32>
    %7 = arith.maximumf %5, %6 : vector<8x256xf32>
    %8 = arith.truncf %7 : vector<8x256xf32> to vector<8x256xbf16>
    %c0_6 = arith.constant 0 : index
    %c0_7 = arith.constant 0 : index
    %9 = vector.load %arg4[%c0_6, %c0_7] : memref<256x64xbf16, #tpu.memory_space<vmem>>, vector<256x64xbf16>
    %cst_8 = arith.constant dense<0.000000e+00> : vector<8x64xf32>
    %10 = tpu.matmul %8, %9, %cst_8 {dimension_numbers = #tpu.dot_dimension_numbers<[1], [0], [0], [1], [0, 0, 1, 1], [], []>} : vector<8x256xbf16>, vector<256x64xbf16>, vector<8x64xf32> -> vector<8x64xf32>
    %c0_9 = arith.constant 0 : index
    %c0_10 = arith.constant 0 : index
    %11 = vector.load %arg5[%c0_9, %c0_10] : memref<1x64xf32, #tpu.memory_space<vmem>>, vector<1x64xf32>
    %12 = vector.broadcast %11 : vector<1x64xf32> to vector<8x64xf32>
    %13 = arith.addf %10, %12 : vector<8x64xf32>
    %cst_11 = arith.constant 0.000000e+00 : f32
    %14 = vector.broadcast %cst_11 : f32 to vector<8x64xf32>
    %15 = arith.maximumf %13, %14 : vector<8x64xf32>
    %c0_12 = arith.constant 0 : index
    %c0_13 = arith.constant 0 : index
    %16 = vector.load %arg6[%c0_12, %c0_13] : memref<1x64xf32, #tpu.memory_space<vmem>>, vector<1x64xf32>
    %17 = vector.broadcast %16 : vector<1x64xf32> to vector<8x64xf32>
    %18 = arith.mulf %15, %17 : vector<8x64xf32>
    %cst_14 = arith.constant dense<0.000000e+00> : vector<8xf32>
    %19 = vector.multi_reduction <add>, %18, %cst_14 [1] : vector<8x64xf32> to vector<8xf32>
    %20 = vector.shape_cast %19 : vector<8xf32> to vector<8x1xf32>
    %c0_15 = arith.constant 0 : index
    %c0_16 = arith.constant 0 : index
    %21 = vector.load %arg7[%c0_15, %c0_16] : memref<1x1xf32, #tpu.memory_space<vmem>>, vector<1x1xf32>
    %22 = vector.broadcast %21 : vector<1x1xf32> to vector<8x1xf32>
    %23 = arith.addf %20, %22 : vector<8x1xf32>
    %c0_17 = arith.constant 0 : index
    %c0_18 = arith.constant 0 : index
    %24 = vector.load %arg8[%c0_17, %c0_18] : memref<8x1xf32, #tpu.memory_space<vmem>>, vector<8x1xf32>
    tpu.vector_store %arg8[%c0_17, %c0_18], %23 {strides = array<i32>} : memref<8x1xf32, #tpu.memory_space<vmem>>, vector<8x1xf32>,
    return
  }
  func.func @transform_0(%arg0: i32) -> (i32, i32) {
    %c0_i32 = arith.constant 0 : i32
    %c0_i32_0 = arith.constant 0 : i32
    return %arg0, %c0_i32 : i32, i32
  }
  func.func @transform_1(%arg0: i32) -> (i32, i32) {
    %c0_i32 = arith.constant 0 : i32
    %c0_i32_0 = arith.constant 0 : i32
    %c0_i32_1 = arith.constant 0 : i32
    return %c0_i32, %c0_i32_0 : i32, i32
  }
  func.func @transform_2(%arg0: i32) -> (i32, i32) {
    %c0_i32 = arith.constant 0 : i32
    %c0_i32_0 = arith.constant 0 : i32
    %c0_i32_1 = arith.constant 0 : i32
    return %c0_i32, %c0_i32_0 : i32, i32
  }
  func.func @transform_3(%arg0: i32) -> (i32, i32) {
    %c0_i32 = arith.constant 0 : i32
    %c0_i32_0 = arith.constant 0 : i32
    %c0_i32_1 = arith.constant 0 : i32
    return %c0_i32, %c0_i32_0 : i32, i32
  }
  func.func @transform_4(%arg0: i32) -> (i32, i32) {
    %c0_i32 = arith.constant 0 : i32
    %c0_i32_0 = arith.constant 0 : i32
    %c0_i32_1 = arith.constant 0 : i32
    return %c0_i32, %c0_i32_0 : i32, i32
  }
  func.func @transform_5(%arg0: i32) -> (i32, i32) {
    %c0_i32 = arith.constant 0 : i32
    %c0_i32_0 = arith.constant 0 : i32
    %c0_i32_1 = arith.constant 0 : i32
    return %c0_i32, %c0_i32_0 : i32, i32
  }
  func.func @transform_6(%arg0: i32) -> (i32, i32) {
    %c0_i32 = arith.constant 0 : i32
    %c0_i32_0 = arith.constant 0 : i32
    %c0_i32_1 = arith.constant 0 : i32
    return %c0_i32, %c0_i32_0 : i32, i32
  }
  func.func @transform_7(%arg0: i32) -> (i32, i32) {
    %c0_i32 = arith.constant 0 : i32
    %c0_i32_0 = arith.constant 0 : i32
    return %arg0, %c0_i32 : i32, i32
  }
}

</mosaic_0001>

<bundles_post_ra>
// kernel: tpu_custom_call.1
= control target key start
LH: loop header
LB: loop body
LE: loop exit
PB: predicated region body
PF: predicated region fallthrough
CT: control target
= control target key end

     0   :  { %s2445_s0 = inlined_call_operand.vmem [shape: bf16[8,1536], index: 0, kind: input, shape index: {}]   ;;  %s2446_s1 = inlined_call_operand.hbm [shape: bf16[1536,256], index: 1, kind: input, shape index: {}]   ;;  %s2447_s2 = inlined_call_operand.vmem [shape: f32[1,256], index: 2, kind: input, shape index: {}]   ;;  %s2448_s3 = inlined_call_operand.vmem [shape: bf16[256,64], index: 3, kind: input, shape index: {}]   ;;  %s2449_s4 = inlined_call_operand.vmem [shape: f32[1,64], index: 4, kind: input, shape index: {}]   ;;  %s2450_s5 = inlined_call_operand.vmem [shape: f32[1,64], index: 5, kind: input, shape index: {}]   ;;  %s2451_s6 = inlined_call_operand.<no memory space> [shape: f32[1,1], index: 6, kind: input, shape index: {}]   ;;  %s2452_s7 = inlined_call_operand.vmem [shape: f32[8,1], index: 7, kind: output, shape index: {}]  }
   0x1   :  { %v12_v0 = vstv %s2451_s6 }
   0x2   :  { %13 = vst [vmem:[#allocation2] sm:$0x1] %v12_v0 }
   0x3   :  { %14 = vsyncpa [#allocation4], 0  ;;  %s2294_s26 = smov [#allocation3]  }
   0x4   :  { %s22_s27 = sshll.u32 %s2294_s26, 4  ;;  %s23_s27 = int_to_ptr.vmem [resolvable:$true] %s22_s27 }
   0x5   :  { %s2280_s28 = scalar_lea.vmem %s23_s27, 24576  ;;  %p2285_p1 = scmp.lt.s32.totalorder %s23_s27, %s23_s27 }
   0x6   :  { %p2281_p0 = scmp.ne.s32.totalorder %s23_s27, %s2280_s28  ;;  %p2286_p2 = scmp.lt.s32.totalorder %s2280_s28, %s2280_s28 }
   0x8   :  { %p2287_p3 = por %p2286_p2, %p2285_p1 }
   0xa   :  { %p2288_p4 = pnand %p2287_p3, %p2281_p0 }
   0xc   :  { %2291 = shalt.err (!%p2288_p4)
}
   0xd   :  { %s2295_s29 = smov 128   ;;  %s2296_s30 = smov 8  }
   0xe   :  { %28 = dma.hbm_to_vmem [thread:$0]  %s2446_s1, 24576, %s23_s27, [#allocation4], %s2295_s29, %s2295_s29, %s2296_s30  }
   0xf   :  { %2292 = dma.done.wait [#allocation4], 24576  }
  0x10   :  { %2293 = vsyncadd [#allocation4], 4294942720  ;;  %v1956_v1 = vld [vmem:[#allocation3 + $0x74] ss:$8 sps:$4 sm:$0xff]   ;;  %v1960_v3 = vld [vmem:[#allocation3 + $0x70] ss:$8 sps:$4 sm:$0xff]  }
  0x11   :  { %v1958_v2 = vld [vmem:[#allocation3 + $0x174] ss:$8 sps:$4 sm:$0xff]   ;;  %1255 = vmatprep.subr.bf16.mxu0 %v1956_v1  ;;  %v1961_v4 = vld [vmem:[#allocation3 + $0x170] ss:$8 sps:$4 sm:$0xff]   ;;  %v1962_v5 = vld [vmem:[#allocation3 + $0x64] ss:$8 sps:$4 sm:$0xff]  }
  0x12   :  { %1296 = vmatprep.subr.bf16.mxu1 %v1958_v2  ;;  %1256 = vmatpush1.bf16.msra.mxu0 %v1960_v3  ;;  %v1964_v6 = vld [vmem:[#allocation3 + $0x164] ss:$8 sps:$4 sm:$0xff]   ;;  %v1966_v7 = vld [vmem:[#allocation3 + $0x60] ss:$8 sps:$4 sm:$0xff]   ;;  %v1968_v9 = vld [vmem:[#allocation3 + $0x54] ss:$8 sps:$4 sm:$0xff]  }
  0x13   :  { %1297 = vmatpush1.bf16.msra.mxu1 %v1961_v4  ;;  %1257 = vmatprep.subr.bf16.mxu0 %v1962_v5  ;;  %v1967_v8 = vld [vmem:[#allocation3 + $0x160] ss:$8 sps:$4 sm:$0xff]   ;;  %v1970_v10 = vld [vmem:[#allocation3 + $0x154] ss:$8 sps:$4 sm:$0xff]   ;;  %v1972_v11 = vld [vmem:[#allocation3 + $0x50] ss:$8 sps:$4 sm:$0xff]  }
  0x14   :  { %1298 = vmatprep.subr.bf16.mxu1 %v1964_v6  ;;  %v1973_v12 = vld [vmem:[#allocation3 + $0x150] ss:$8 sps:$4 sm:$0xff]   ;;  %v1974_v13 = vld [vmem:[#allocation3 + $0x44] ss:$8 sps:$4 sm:$0xff]   ;;  %v1978_v15 = vld [vmem:[#allocation3 + $0x40] ss:$8 sps:$4 sm:$0xff]  }
  0x15   :  { %v1976_v14 = vld [vmem:[#allocation3 + $0x144] ss:$8 sps:$4 sm:$0xff]   ;;  %v1979_v16 = vld [vmem:[#allocation3 + $0x140] ss:$8 sps:$4 sm:$0xff]   ;;  %v1980_v17 = vld [vmem:[#allocation3 + $0x34] ss:$8 sps:$4 sm:$0xff]  }
  0x16   :  { %1258 = vmatpush1.bf16.msra.mxu0 %v1966_v7  ;;  %v1982_v18 = vld [vmem:[#allocation3 + $0x134] ss:$8 sps:$4 sm:$0xff]   ;;  %v1984_v19 = vld [vmem:[#allocation3 + $0x30] ss:$8 sps:$4 sm:$0xff]   ;;  %v1986_v21 = vld [vmem:[#allocation3 + $0x24] ss:$8 sps:$4 sm:$0xff]  }
  0x17   :  { %1299 = vmatpush1.bf16.msra.mxu1 %v1967_v8  ;;  %1259 = vmatprep.subr.bf16.mxu0 %v1968_v9  ;;  %v1985_v20 = vld [vmem:[#allocation3 + $0x130] ss:$8 sps:$4 sm:$0xff]   ;;  %v1988_v22 = vld [vmem:[#allocation3 + $0x124] ss:$8 sps:$4 sm:$0xff]   ;;  %v1990_v23 = vld [vmem:[#allocation3 + $0x20] ss:$8 sps:$4 sm:$0xff]  }
  0x18   :  { %1300 = vmatprep.subr.bf16.mxu1 %v1970_v10  ;;  %v1991_v24 = vld [vmem:[#allocation3 + $0x120] ss:$8 sps:$4 sm:$0xff]   ;;  %v1992_v25 = vld [vmem:[#allocation3 + $0x14] ss:$8 sps:$4 sm:$0xff]   ;;  %v1996_v27 = vld [vmem:[#allocation3 + $0x10] ss:$8 sps:$4 sm:$0xff]  }
  0x19   :  { %v1994_v26 = vld [vmem:[#allocation3 + $0x114] ss:$8 sps:$4 sm:$0xff]   ;;  %v1997_v28 = vld [vmem:[#allocation3 + $0x110] ss:$8 sps:$4 sm:$0xff]   ;;  %v1998_v29 = vld [vmem:[#allocation3 + $0x4] ss:$8 sps:$4 sm:$0xff]  }
  0x1a   :  { %1260 = vmatpush1.bf16.msra.mxu0 %v1972_v11  ;;  %v2000_v30 = vld [vmem:[#allocation3 + $0x104] ss:$8 sps:$4 sm:$0xff]   ;;  %v2002_v31 = vld [vmem:[#allocation3] ss:$8 sps:$4 sm:$0xff]   ;;  %v2004_v33 = vld [vmem:[#allocation3 + $0xf4] ss:$8 sps:$4 sm:$0xff]  }
  0x1b   :  { %1301 = vmatpush1.bf16.msra.mxu1 %v1973_v12  ;;  %1261 = vmatprep.subr.bf16.mxu0 %v1974_v13  ;;  %v2003_v32 = vld [vmem:[#allocation3 + $0x100] ss:$8 sps:$4 sm:$0xff]   ;;  %v2006_v34 = vld [vmem:[#allocation3 + $0x1f4] ss:$8 sps:$4 sm:$0xff]   ;;  %v2008_v35 = vld [vmem:[#allocation3 + $0xf0] ss:$8 sps:$4 sm:$0xff]  }
  0x1c   :  { %1302 = vmatprep.subr.bf16.mxu1 %v1976_v14  ;;  %v2009_v36 = vld [vmem:[#allocation3 + $0x1f0] ss:$8 sps:$4 sm:$0xff]   ;;  %v2010_v37 = vld [vmem:[#allocation3 + $0xe4] ss:$8 sps:$4 sm:$0xff]   ;;  %v2014_v39 = vld [vmem:[#allocation3 + $0xe0] ss:$8 sps:$4 sm:$0xff]  }
  0x1d   :  { %v2012_v38 = vld [vmem:[#allocation3 + $0x1e4] ss:$8 sps:$4 sm:$0xff]   ;;  %v2015_v40 = vld [vmem:[#allocation3 + $0x1e0] ss:$8 sps:$4 sm:$0xff]   ;;  %v2016_v41 = vld [vmem:[#allocation3 + $0xd4] ss:$8 sps:$4 sm:$0xff]  }
  0x1e   :  { %1262 = vmatpush1.bf16.msra.mxu0 %v1978_v15  ;;  %v2018_v42 = vld [vmem:[#allocation3 + $0x1d4] ss:$8 sps:$4 sm:$0xff]   ;;  %v2020_v43 = vld [vmem:[#allocation3 + $0xd0] ss:$8 sps:$4 sm:$0xff]   ;;  %v2022_v45 = vld [vmem:[#allocation3 + $0xc4] ss:$8 sps:$4 sm:$0xff]  }
  0x1f   :  { %1303 = vmatpush1.bf16.msra.mxu1 %v1979_v16  ;;  %1263 = vmatprep.subr.bf16.mxu0 %v1980_v17  ;;  %v2021_v44 = vld [vmem:[#allocation3 + $0x1d0] ss:$8 sps:$4 sm:$0xff]   ;;  %v2024_v46 = vld [vmem:[#allocation3 + $0x1c4] ss:$8 sps:$4 sm:$0xff]   ;;  %v2026_v50 = vld [vmem:[#allocation3 + $0xc0] ss:$8 sps:$4 sm:$0xff]  }
  0x20   :  { %1304 = vmatprep.subr.bf16.mxu1 %v1982_v18  ;;  %v43_v47 = vld [vmem:[%s2445_s0] sm:$0xff]  ;;  %v44_v49 = vld [vmem:[%s2445_s0 + $0x8] sm:$0xff]  ;;  %v2032_v55 = vld [vmem:[#allocation3 + $0xb0] ss:$8 sps:$4 sm:$0xff]   ;;  %vm1689_vm0 = vcmask 523264   ;;  %vm1701_vm1 = vcmask 7168  }
  0x21   :  { %v1709_v48 = vcombine.high %v43_v47, %v43_v47  ;;  %v2027_v51 = vld [vmem:[#allocation3 + $0x1c0] ss:$8 sps:$4 sm:$0xff]   ;;  %v1711_v52 = vcombine.high %v44_v49, %v44_v49  ;;  %v2028_v53 = vld [vmem:[#allocation3 + $0xb4] ss:$8 sps:$4 sm:$0xff]   ;;  %v2033_v56 = vld [vmem:[#allocation3 + $0x1b0] ss:$8 sps:$4 sm:$0xff]   ;;  %v1708_v7 = vcombine.low %v43_v47, %v43_v47  ;;  %v1710_v8 = vcombine.low %v44_v49, %v44_v49 }
  0x22   :  { %1264 = vmatpush1.bf16.msra.mxu0 %v1984_v19  ;;  %v2030_v54 = vld [vmem:[#allocation3 + $0x1b4] ss:$8 sps:$4 sm:$0xff]   ;;  %v2034_v57 = vld [vmem:[#allocation3 + $0xa4] ss:$8 sps:$4 sm:$0xff]   ;;  %v2038_v59 = vld [vmem:[#allocation3 + $0xa0] ss:$8 sps:$4 sm:$0xff]  }
  0x23   :  { %1305 = vmatpush1.bf16.msra.mxu1 %v1985_v20  ;;  %1265 = vmatprep.subr.bf16.mxu0 %v1986_v21  ;;  %v2036_v58 = vld [vmem:[#allocation3 + $0x1a4] ss:$8 sps:$4 sm:$0xff]   ;;  %v2039_v60 = vld [vmem:[#allocation3 + $0x1a0] ss:$8 sps:$4 sm:$0xff]   ;;  %v2040_v61 = vld [vmem:[#allocation3 + $0x94] ss:$8 sps:$4 sm:$0xff]  }
  0x24   :  { %1306 = vmatprep.subr.bf16.mxu1 %v1988_v22  ;;  %1287 = vmatprep.mubr.bf16.mxu0 %v1709_v48  ;;  %v2042_v62 = vld [vmem:[#allocation3 + $0x194] ss:$8 sps:$4 sm:$0xff]   ;;  %v2044_v63 = vld [vmem:[#allocation3 + $0x90] ss:$8 sps:$4 sm:$0xff]   ;;  %v2046_v1 = vld [vmem:[#allocation3 + $0x84] ss:$8 sps:$4 sm:$0xff]  }
  0x25   :  { %1328 = vmatprep.mubr.bf16.mxu1 %v1711_v52  ;;  %v2045_v0 = vld [vmem:[#allocation3 + $0x190] ss:$8 sps:$4 sm:$0xff]   ;;  %v2048_v2 = vld [vmem:[#allocation3 + $0x184] ss:$8 sps:$4 sm:$0xff]   ;;  %v2050_v3 = vld [vmem:[#allocation3 + $0x80] ss:$8 sps:$4 sm:$0xff]  }
  0x26   :  { %1266 = vmatpush1.bf16.msra.mxu0 %v1990_v23  ;;  %v2051_v4 = vld [vmem:[#allocation3 + $0x180] ss:$8 sps:$4 sm:$0xff]   ;;  %v2058_v5 = vld [vmem:[#allocation3 + $0x274] ss:$8 sps:$4 sm:$0xff]   ;;  %v2056_v9 = vld [vmem:[#allocation3 + $0x270] ss:$8 sps:$4 sm:$0xff]  }
  0x27   :  { %1307 = vmatpush1.bf16.msra.mxu1 %v1991_v24  ;;  %1267 = vmatprep.subr.bf16.mxu0 %v1992_v25  ;;  %v2061_v6 = vld [vmem:[#allocation3 + $0x374] ss:$8 sps:$4 sm:$0xff]   ;;  %v2059_v10 = vld [vmem:[#allocation3 + $0x370] ss:$8 sps:$4 sm:$0xff]   ;;  %v2064_v11 = vld [vmem:[#allocation3 + $0x264] ss:$8 sps:$4 sm:$0xff]  }
  0x28   :  { %1308 = vmatprep.subr.bf16.mxu1 %v1994_v26  ;;  %v2067_v12 = vld [vmem:[#allocation3 + $0x364] ss:$8 sps:$4 sm:$0xff]   ;;  %v2062_v13 = vld [vmem:[#allocation3 + $0x260] ss:$8 sps:$4 sm:$0xff]   ;;  %v2070_v15 = vld [vmem:[#allocation3 + $0x254] ss:$8 sps:$4 sm:$0xff]  }
  0x29   :  { %v2065_v14 = vld [vmem:[#allocation3 + $0x360] ss:$8 sps:$4 sm:$0xff]   ;;  %v2073_v16 = vld [vmem:[#allocation3 + $0x354] ss:$8 sps:$4 sm:$0xff]   ;;  %v2068_v17 = vld [vmem:[#allocation3 + $0x250] ss:$8 sps:$4 sm:$0xff]  }
  0x2a   :  { %1268 = vmatpush1.bf16.msra.mxu0 %v1996_v27  ;;  %v2071_v18 = vld [vmem:[#allocation3 + $0x350] ss:$8 sps:$4 sm:$0xff]   ;;  %v2076_v19 = vld [vmem:[#allocation3 + $0x244] ss:$8 sps:$4 sm:$0xff]   ;;  %v2074_v21 = vld [vmem:[#allocation3 + $0x240] ss:$8 sps:$4 sm:$0xff]  }
  0x2b   :  { %1309 = vmatpush1.bf16.msra.mxu1 %v1997_v28  ;;  %1269 = vmatprep.subr.bf16.mxu0 %v1998_v29  ;;  %v2079_v20 = vld [vmem:[#allocation3 + $0x344] ss:$8 sps:$4 sm:$0xff]   ;;  %v2077_v22 = vld [vmem:[#allocation3 + $0x340] ss:$8 sps:$4 sm:$0xff]   ;;  %v2082_v23 = vld [vmem:[#allocation3 + $0x234] ss:$8 sps:$4 sm:$0xff]  }
  0x2c   :  { %1310 = vmatprep.subr.bf16.mxu1 %v2000_v30  ;;  %v2085_v24 = vld [vmem:[#allocation3 + $0x334] ss:$8 sps:$4 sm:$0xff]   ;;  %v2080_v25 = vld [vmem:[#allocation3 + $0x230] ss:$8 sps:$4 sm:$0xff]   ;;  %v2088_v27 = vld [vmem:[#allocation3 + $0x224] ss:$8 sps:$4 sm:$0xff]  }
  0x2d   :  { %v2083_v26 = vld [vmem:[#allocation3 + $0x330] ss:$8 sps:$4 sm:$0xff]   ;;  %v2091_v28 = vld [vmem:[#allocation3 + $0x324] ss:$8 sps:$4 sm:$0xff]   ;;  %v2086_v29 = vld [vmem:[#allocation3 + $0x220] ss:$8 sps:$4 sm:$0xff]  }
  0x2e   :  { %1270 = vmatpush1.bf16.msra.mxu0 %v2002_v31  ;;  %v2089_v30 = vld [vmem:[#allocation3 + $0x320] ss:$8 sps:$4 sm:$0xff]   ;;  %v2094_v31 = vld [vmem:[#allocation3 + $0x214] ss:$8 sps:$4 sm:$0xff]   ;;  %v2112_v47 = vld [vmem:[#allocation3 + $0x2e4] ss:$8 sps:$4 sm:$0xff]  }
  0x2f   :  { %1311 = vmatpush1.bf16.msra.mxu1 %v2003_v32  ;;  %1271 = vmatprep.subr.bf16.mxu0 %v2004_v33  ;;  %v2097_v32 = vld [vmem:[#allocation3 + $0x314] ss:$8 sps:$4 sm:$0xff]   ;;  %v2115_v48 = vld [vmem:[#allocation3 + $0x3e4] ss:$8 sps:$4 sm:$0xff]   ;;  %v2110_v49 = vld [vmem:[#allocation3 + $0x2e0] ss:$8 sps:$4 sm:$0xff]  }
  0x30   :  { %1312 = vmatprep.subr.bf16.mxu1 %v2006_v34  ;;  %v2352_v33 = vld [vmem:[%s2445_s0 + $0x10] sm:$0xff]  ;;  %v2357_v34 = vld [vmem:[%s2445_s0 + $0x18] sm:$0xff] }
  0x31   :  { %v2121_v52 = vld [vmem:[#allocation3 + $0x3d4] ss:$8 sps:$4 sm:$0xff]  }
  0x32   :  { %1272 = vmatpush2.bf16.msra.mxu0 %v2008_v35  ;;  %v2092_v35 = vld [vmem:[#allocation3 + $0x210] ss:$8 sps:$4 sm:$0xff]  }
  0x33   :  { %1313 = vmatpush2.bf16.msra.mxu1 %v2009_v36  ;;  %1273 = vmatprep.subr.bf16.mxu0 %v2010_v37  ;;  %v2095_v36 = vld [vmem:[#allocation3 + $0x310] ss:$8 sps:$4 sm:$0xff]   ;;  %v1713_v37 = vcombine.high %v2352_v33, %v2352_v33 }
  0x34   :  { %1314 = vmatprep.subr.bf16.mxu1 %v2012_v38  ;;  %v1715_v38 = vcombine.high %v2357_v34, %v2357_v34 }
  0x36   :  { %1274 = vmatpush2.bf16.msra.mxu0 %v2014_v39  ;;  %v2100_v39 = vld [vmem:[#allocation3 + $0x204] ss:$8 sps:$4 sm:$0xff]  }
  0x37   :  { %1315 = vmatpush2.bf16.msra.mxu1 %v2015_v40  ;;  %1275 = vmatprep.subr.bf16.mxu0 %v2016_v41  ;;  %v2103_v40 = vld [vmem:[#allocation3 + $0x304] ss:$8 sps:$4 sm:$0xff]   ;;  %v2098_v41 = vld [vmem:[#allocation3 + $0x200] ss:$8 sps:$4 sm:$0xff]  }
  0x38   :  { %1316 = vmatprep.subr.bf16.mxu1 %v2018_v42  ;;  %v2101_v42 = vld [vmem:[#allocation3 + $0x300] ss:$8 sps:$4 sm:$0xff]  }
  0x3a   :  { %1276 = vmatpush2.bf16.msra.mxu0 %v2020_v43  ;;  %v2106_v43 = vld [vmem:[#allocation3 + $0x2f4] ss:$8 sps:$4 sm:$0xff]  }
  0x3b   :  { %1317 = vmatpush2.bf16.msra.mxu1 %v2021_v44  ;;  %1277 = vmatprep.subr.bf16.mxu0 %v2022_v45  ;;  %v2109_v44 = vld [vmem:[#allocation3 + $0x3f4] ss:$8 sps:$4 sm:$0xff]   ;;  %v2104_v45 = vld [vmem:[#allocation3 + $0x2f0] ss:$8 sps:$4 sm:$0xff]  }
  0x3c   :  { %1318 = vmatprep.subr.bf16.mxu1 %v2024_v46  ;;  %v2107_v46 = vld [vmem:[#allocation3 + $0x3f0] ss:$8 sps:$4 sm:$0xff]  }
  0x3e   :  { %1278 = vmatpush2.bf16.msra.mxu0 %v2026_v50  ;;  %v2113_v50 = vld [vmem:[#allocation3 + $0x3e0] ss:$8 sps:$4 sm:$0xff]  }
  0x3f   :  { %1319 = vmatpush2.bf16.msra.mxu1 %v2027_v51  ;;  %1279 = vmatprep.subr.bf16.mxu0 %v2028_v53  ;;  %v2118_v51 = vld [vmem:[#allocation3 + $0x2d4] ss:$8 sps:$4 sm:$0xff]   ;;  %v2116_v53 = vld [vmem:[#allocation3 + $0x2d0] ss:$8 sps:$4 sm:$0xff]  }
  0x40   :  { %1320 = vmatprep.subr.bf16.mxu1 %v2030_v54  ;;  %v2119_v54 = vld [vmem:[#allocation3 + $0x3d0] ss:$8 sps:$4 sm:$0xff]  }
  0x42   :  { %1280 = vmatpush2.bf16.msra.mxu0 %v2032_v55  ;;  %v2124_v55 = vld [vmem:[#allocation3 + $0x2c4] ss:$8 sps:$4 sm:$0xff]  }
  0x43   :  { %1321 = vmatpush2.bf16.msra.mxu1 %v2033_v56  ;;  %1281 = vmatprep.subr.bf16.mxu0 %v2034_v57  ;;  %v2127_v56 = vld [vmem:[#allocation3 + $0x3c4] ss:$8 sps:$4 sm:$0xff]   ;;  %v2122_v57 = vld [vmem:[#allocation3 + $0x2c0] ss:$8 sps:$4 sm:$0xff]  }
  0x44   :  { %1322 = vmatprep.subr.bf16.mxu1 %v2036_v58  ;;  %v2125_v58 = vld [vmem:[#allocation3 + $0x3c0] ss:$8 sps:$4 sm:$0xff]  }
  0x46   :  { %1282 = vmatpush2.bf16.msra.mxu0 %v2038_v59  ;;  %v2130_v59 = vld [vmem:[#allocation3 + $0x2b4] ss:$8 sps:$4 sm:$0xff]  }
  0x47   :  { %1323 = vmatpush2.bf16.msra.mxu1 %v2039_v60  ;;  %1283 = vmatprep.subr.bf16.mxu0 %v2040_v61  ;;  %v2133_v60 = vld [vmem:[#allocation3 + $0x3b4] ss:$8 sps:$4 sm:$0xff]   ;;  %v2128_v61 = vld [vmem:[#allocation3 + $0x2b0] ss:$8 sps:$4 sm:$0xff]  }
  0x48   :  { %1324 = vmatprep.subr.bf16.mxu1 %v2042_v62  ;;  %v2131_v62 = vld [vmem:[#allocation3 + $0x3b0] ss:$8 sps:$4 sm:$0xff]  }
  0x4a   :  { %1284 = vmatpush2.bf16.msra.mxu0 %v2044_v63  ;;  %v2136_v63 = vld [vmem:[#allocation3 + $0x2a4] ss:$8 sps:$4 sm:$0xff]  }
  0x4b   :  { %1325 = vmatpush2.bf16.msra.mxu1 %v2045_v0  ;;  %1285 = vmatprep.subr.bf16.mxu0 %v2046_v1  ;;  %v2139_v0 = vld [vmem:[#allocation3 + $0x3a4] ss:$8 sps:$4 sm:$0xff]   ;;  %v2134_v1 = vld [vmem:[#allocation3 + $0x2a0] ss:$8 sps:$4 sm:$0xff]  }
  0x4c   :  { %1326 = vmatprep.subr.bf16.mxu1 %v2048_v2  ;;  %v2137_v2 = vld [vmem:[#allocation3 + $0x3a0] ss:$8 sps:$4 sm:$0xff]  }
  0x4e   :  { %1286 = vmatpush2.bf16.msra.mxu0 %v2050_v3  ;;  %v2142_v3 = vld [vmem:[#allocation3 + $0x294] ss:$8 sps:$4 sm:$0xff]  }
  0x4f   :  { %1327 = vmatpush2.bf16.msra.mxu1 %v2051_v4  ;;  %1337 = vmatprep.subr.bf16.mxu0 %v2058_v5  ;;  %v2145_v4 = vld [vmem:[#allocation3 + $0x394] ss:$8 sps:$4 sm:$0xff]   ;;  %v2140_v5 = vld [vmem:[#allocation3 + $0x290] ss:$8 sps:$4 sm:$0xff]  }
  0x50   :  { %1378 = vmatprep.subr.bf16.mxu1 %v2061_v6  ;;  %v2143_v6 = vld [vmem:[#allocation3 + $0x390] ss:$8 sps:$4 sm:$0xff]  }
  0x51   :  { %1288 = vmatmul.mubr.bf16.vlgmr.msra.gmra.mxu0 %v1708_v7  ;;  %v2148_v7 = vld [vmem:[#allocation3 + $0x284] ss:$8 sps:$4 sm:$0xff]  }
  0x52   :  { %1329 = vmatmul.mubr.bf16.vlgmr.msra.gmra.mxu1 %v1710_v8  ;;  %1338 = vmatpush1.bf16.msra.mxu0 %v2056_v9  ;;  %v2151_v8 = vld [vmem:[#allocation3 + $0x384] ss:$8 sps:$4 sm:$0xff]   ;;  %v2146_v9 = vld [vmem:[#allocation3 + $0x280] ss:$8 sps:$4 sm:$0xff]  }
  0x53   :  { %1379 = vmatpush1.bf16.msra.mxu1 %v2059_v10  ;;  %1339 = vmatprep.subr.bf16.mxu0 %v2064_v11  ;;  %v2149_v10 = vld [vmem:[#allocation3 + $0x380] ss:$8 sps:$4 sm:$0xff]   ;;  %v2158_v11 = vld [vmem:[#allocation3 + $0x474] ss:$8 sps:$4 sm:$0xff]  }
  0x54   :  { %1380 = vmatprep.subr.bf16.mxu1 %v2067_v12  ;;  %1369 = vmatprep.mubr.bf16.mxu0 %v1713_v37  ;;  %v2161_v12 = vld [vmem:[#allocation3 + $0x574] ss:$8 sps:$4 sm:$0xff]   ;;  %v2188_v37 = vld [vmem:[#allocation3 + $0x424] ss:$8 sps:$4 sm:$0xff]  }
  0x55   :  { %1410 = vmatprep.mubr.bf16.mxu1 %v1715_v38  ;;  %v2191_v38 = vld [vmem:[#allocation3 + $0x524] ss:$8 sps:$4 sm:$0xff]  }
  0x56   :  { %1340 = vmatpush1.bf16.msra.mxu0 %v2062_v13  ;;  %v1712_v13 = vcombine.low %v2352_v33, %v2352_v33  ;;  %v2182_v33 = vld [vmem:[#allocation3 + $0x434] ss:$8 sps:$4 sm:$0xff]  }
  0x57   :  { %1381 = vmatpush1.bf16.msra.mxu1 %v2065_v14  ;;  %1341 = vmatprep.subr.bf16.mxu0 %v2070_v15  ;;  %v1714_v14 = vcombine.low %v2357_v34, %v2357_v34  ;;  %v2156_v15 = vld [vmem:[#allocation3 + $0x470] ss:$8 sps:$4 sm:$0xff]   ;;  %v2185_v34 = vld [vmem:[#allocation3 + $0x534] ss:$8 sps:$4 sm:$0xff]  }
  0x58   :  { %1382 = vmatprep.subr.bf16.mxu1 %v2073_v16  ;;  %v2159_v16 = vld [vmem:[#allocation3 + $0x570] ss:$8 sps:$4 sm:$0xff]  }
  0x5a   :  { %1342 = vmatpush1.bf16.msra.mxu0 %v2068_v17  ;;  %v2164_v17 = vld [vmem:[#allocation3 + $0x464] ss:$8 sps:$4 sm:$0xff]  }
  0x5b   :  { %1383 = vmatpush1.bf16.msra.mxu1 %v2071_v18  ;;  %1343 = vmatprep.subr.bf16.mxu0 %v2076_v19  ;;  %v2167_v18 = vld [vmem:[#allocation3 + $0x564] ss:$8 sps:$4 sm:$0xff]  }
  0x5c   :  { %1384 = vmatprep.subr.bf16.mxu1 %v2079_v20  ;;  %v2370_v19 = vld [vmem:[%s2445_s0 + $0x20] sm:$0xff]  ;;  %v2375_v20 = vld [vmem:[%s2445_s0 + $0x28] sm:$0xff] }
  0x5e   :  { %1344 = vmatpush1.bf16.msra.mxu0 %v2074_v21  ;;  %v2162_v21 = vld [vmem:[#allocation3 + $0x460] ss:$8 sps:$4 sm:$0xff]  }
  0x5f   :  { %1385 = vmatpush1.bf16.msra.mxu1 %v2077_v22  ;;  %1345 = vmatprep.subr.bf16.mxu0 %v2082_v23  ;;  %v2165_v22 = vld [vmem:[#allocation3 + $0x560] ss:$8 sps:$4 sm:$0xff]   ;;  %v1717_v23 = vcombine.high %v2370_v19, %v2370_v19 }
  0x60   :  { %1386 = vmatprep.subr.bf16.mxu1 %v2085_v24  ;;  %v1719_v24 = vcombine.high %v2375_v20, %v2375_v20 }
  0x62   :  { %1346 = vmatpush1.bf16.msra.mxu0 %v2080_v25  ;;  %v2170_v25 = vld [vmem:[#allocation3 + $0x454] ss:$8 sps:$4 sm:$0xff]  }
  0x63   :  { %1387 = vmatpush1.bf16.msra.mxu1 %v2083_v26  ;;  %1347 = vmatprep.subr.bf16.mxu0 %v2088_v27  ;;  %v2173_v26 = vld [vmem:[#allocation3 + $0x554] ss:$8 sps:$4 sm:$0xff]   ;;  %v2168_v27 = vld [vmem:[#allocation3 + $0x450] ss:$8 sps:$4 sm:$0xff]  }
  0x64   :  { %1388 = vmatprep.subr.bf16.mxu1 %v2091_v28  ;;  %v2171_v28 = vld [vmem:[#allocation3 + $0x550] ss:$8 sps:$4 sm:$0xff]  }
  0x66   :  { %1348 = vmatpush1.bf16.msra.mxu0 %v2086_v29  ;;  %v2176_v29 = vld [vmem:[#allocation3 + $0x444] ss:$8 sps:$4 sm:$0xff]  }
  0x67   :  { %1389 = vmatpush1.bf16.msra.mxu1 %v2089_v30  ;;  %1349 = vmatprep.subr.bf16.mxu0 %v2094_v31  ;;  %v2179_v30 = vld [vmem:[#allocation3 + $0x544] ss:$8 sps:$4 sm:$0xff]   ;;  %v2174_v31 = vld [vmem:[#allocation3 + $0x440] ss:$8 sps:$4 sm:$0xff]  }
  0x68   :  { %1390 = vmatprep.subr.bf16.mxu1 %v2097_v32  ;;  %v2177_v32 = vld [vmem:[#allocation3 + $0x540] ss:$8 sps:$4 sm:$0xff]  }
  0x6a   :  { %1350 = vmatpush1.bf16.msra.mxu0 %v2092_v35  ;;  %v2180_v35 = vld [vmem:[#allocation3 + $0x430] ss:$8 sps:$4 sm:$0xff]  }
  0x6b   :  { %1391 = vmatpush1.bf16.msra.mxu1 %v2095_v36  ;;  %1351 = vmatprep.subr.bf16.mxu0 %v2100_v39  ;;  %v2183_v36 = vld [vmem:[#allocation3 + $0x530] ss:$8 sps:$4 sm:$0xff]   ;;  %v2186_v39 = vld [vmem:[#allocation3 + $0x420] ss:$8 sps:$4 sm:$0xff]  }
  0x6c   :  { %1392 = vmatprep.subr.bf16.mxu1 %v2103_v40  ;;  %v2189_v40 = vld [vmem:[#allocation3 + $0x520] ss:$8 sps:$4 sm:$0xff]  }
  0x6e   :  { %1352 = vmatpush1.bf16.msra.mxu0 %v2098_v41  ;;  %v2194_v41 = vld [vmem:[#allocation3 + $0x414] ss:$8 sps:$4 sm:$0xff]  }
  0x6f   :  { %1393 = vmatpush1.bf16.msra.mxu1 %v2101_v42  ;;  %1353 = vmatprep.subr.bf16.mxu0 %v2106_v43  ;;  %v2197_v42 = vld [vmem:[#allocation3 + $0x514] ss:$8 sps:$4 sm:$0xff]   ;;  %v2192_v43 = vld [vmem:[#allocation3 + $0x410] ss:$8 sps:$4 sm:$0xff]  }
  0x70   :  { %1394 = vmatprep.subr.bf16.mxu1 %v2109_v44  ;;  %v2195_v44 = vld [vmem:[#allocation3 + $0x510] ss:$8 sps:$4 sm:$0xff]  }
  0x72   :  { %1354 = vmatpush2.bf16.msra.mxu0 %v2104_v45  ;;  %v2200_v45 = vld [vmem:[#allocation3 + $0x404] ss:$8 sps:$4 sm:$0xff]  }
  0x73   :  { %1395 = vmatpush2.bf16.msra.mxu1 %v2107_v46  ;;  %1355 = vmatprep.subr.bf16.mxu0 %v2112_v47  ;;  %v2203_v46 = vld [vmem:[#allocation3 + $0x504] ss:$8 sps:$4 sm:$0xff]   ;;  %v2198_v47 = vld [vmem:[#allocation3 + $0x400] ss:$8 sps:$4 sm:$0xff]  }
  0x74   :  { %1396 = vmatprep.subr.bf16.mxu1 %v2115_v48  ;;  %v2201_v48 = vld [vmem:[#allocation3 + $0x500] ss:$8 sps:$4 sm:$0xff]  }
  0x76   :  { %1356 = vmatpush2.bf16.msra.mxu0 %v2110_v49  ;;  %v2206_v49 = vld [vmem:[#allocation3 + $0x4f4] ss:$8 sps:$4 sm:$0xff]  }
  0x77   :  { %1397 = vmatpush2.bf16.msra.mxu1 %v2113_v50  ;;  %1357 = vmatprep.subr.bf16.mxu0 %v2118_v51  ;;  %v2209_v50 = vld [vmem:[#allocation3 + $0x5f4] ss:$8 sps:$4 sm:$0xff]   ;;  %v2204_v51 = vld [vmem:[#allocation3 + $0x4f0] ss:$8 sps:$4 sm:$0xff]  }
  0x78   :  { %1398 = vmatprep.subr.bf16.mxu1 %v2121_v52  ;;  %v2207_v52 = vld [vmem:[#allocation3 + $0x5f0] ss:$8 sps:$4 sm:$0xff]  }
  0x7a   :  { %1358 = vmatpush2.bf16.msra.mxu0 %v2116_v53  ;;  %v2212_v53 = vld [vmem:[#allocation3 + $0x4e4] ss:$8 sps:$4 sm:$0xff]  }
  0x7b   :  { %1399 = vmatpush2.bf16.msra.mxu1 %v2119_v54  ;;  %1359 = vmatprep.subr.bf16.mxu0 %v2124_v55  ;;  %v2215_v54 = vld [vmem:[#allocation3 + $0x5e4] ss:$8 sps:$4 sm:$0xff]   ;;  %v2210_v55 = vld [vmem:[#allocation3 + $0x4e0] ss:$8 sps:$4 sm:$0xff]  }
  0x7c   :  { %1400 = vmatprep.subr.bf16.mxu1 %v2127_v56  ;;  %v2213_v56 = vld [vmem:[#allocation3 + $0x5e0] ss:$8 sps:$4 sm:$0xff]  }
  0x7e   :  { %1360 = vmatpush2.bf16.msra.mxu0 %v2122_v57  ;;  %v2218_v57 = vld [vmem:[#allocation3 + $0x4d4] ss:$8 sps:$4 sm:$0xff]  }
  0x7f   :  { %1401 = vmatpush2.bf16.msra.mxu1 %v2125_v58  ;;  %1361 = vmatprep.subr.bf16.mxu0 %v2130_v59  ;;  %v2221_v58 = vld [vmem:[#allocation3 + $0x5d4] ss:$8 sps:$4 sm:$0xff]   ;;  %v2216_v59 = vld [vmem:[#allocation3 + $0x4d0] ss:$8 sps:$4 sm:$0xff]  }
  0x80   :  { %1402 = vmatprep.subr.bf16.mxu1 %v2133_v60  ;;  %v2219_v60 = vld [vmem:[#allocation3 + $0x5d0] ss:$8 sps:$4 sm:$0xff]  }
  0x82   :  { %1362 = vmatpush2.bf16.msra.mxu0 %v2128_v61  ;;  %v2224_v61 = vld [vmem:[#allocation3 + $0x4c4] ss:$8 sps:$4 sm:$0xff]  }
  0x83   :  { %1403 = vmatpush2.bf16.msra.mxu1 %v2131_v62  ;;  %1363 = vmatprep.subr.bf16.mxu0 %v2136_v63  ;;  %v2227_v62 = vld [vmem:[#allocation3 + $0x5c4] ss:$8 sps:$4 sm:$0xff]   ;;  %v2222_v63 = vld [vmem:[#allocation3 + $0x4c0] ss:$8 sps:$4 sm:$0xff]  }
  0x84   :  { %1404 = vmatprep.subr.bf16.mxu1 %v2139_v0  ;;  %v2225_v0 = vld [vmem:[#allocation3 + $0x5c0] ss:$8 sps:$4 sm:$0xff]  }
  0x86   :  { %1364 = vmatpush2.bf16.msra.mxu0 %v2134_v1  ;;  %v2230_v1 = vld [vmem:[#allocation3 + $0x4b4] ss:$8 sps:$4 sm:$0xff]  }
  0x87   :  { %1405 = vmatpush2.bf16.msra.mxu1 %v2137_v2  ;;  %1365 = vmatprep.subr.bf16.mxu0 %v2142_v3  ;;  %v2233_v2 = vld [vmem:[#allocation3 + $0x5b4] ss:$8 sps:$4 sm:$0xff]   ;;  %v2228_v3 = vld [vmem:[#allocation3 + $0x4b0] ss:$8 sps:$4 sm:$0xff]  }
  0x88   :  { %1406 = vmatprep.subr.bf16.mxu1 %v2145_v4  ;;  %v2231_v4 = vld [vmem:[#allocation3 + $0x5b0] ss:$8 sps:$4 sm:$0xff]  }
  0x8a   :  { %1366 = vmatpush2.bf16.msra.mxu0 %v2140_v5  ;;  %v2236_v5 = vld [vmem:[#allocation3 + $0x4a4] ss:$8 sps:$4 sm:$0xff]  }
  0x8b   :  { %1407 = vmatpush2.bf16.msra.mxu1 %v2143_v6  ;;  %1367 = vmatprep.subr.bf16.mxu0 %v2148_v7  ;;  %v2239_v6 = vld [vmem:[#allocation3 + $0x5a4] ss:$8 sps:$4 sm:$0xff]   ;;  %v2234_v7 = vld [vmem:[#allocation3 + $0x4a0] ss:$8 sps:$4 sm:$0xff]  }
  0x8c   :  { %1408 = vmatprep.subr.bf16.mxu1 %v2151_v8  ;;  %v2237_v8 = vld [vmem:[#allocation3 + $0x5a0] ss:$8 sps:$4 sm:$0xff]  }
  0x8e   :  { %1368 = vmatpush2.bf16.msra.mxu0 %v2146_v9  ;;  %v2242_v9 = vld [vmem:[#allocation3 + $0x494] ss:$8 sps:$4 sm:$0xff]  }
  0x8f   :  { %1409 = vmatpush2.bf16.msra.mxu1 %v2149_v10  ;;  %1419 = vmatprep.subr.bf16.mxu0 %v2158_v11  ;;  %v2245_v10 = vld [vmem:[#allocation3 + $0x594] ss:$8 sps:$4 sm:$0xff]   ;;  %v2240_v11 = vld [vmem:[#allocation3 + $0x490] ss:$8 sps:$4 sm:$0xff]  }
  0x90   :  { %1460 = vmatprep.subr.bf16.mxu1 %v2161_v12  ;;  %v2243_v12 = vld [vmem:[#allocation3 + $0x590] ss:$8 sps:$4 sm:$0xff]  }
  0x91   :  { %1370 = vmatmul.mubr.bf16.vlgmr.msra.gmra.mxu0 %v1712_v13  ;;  %v2248_v13 = vld [vmem:[#allocation3 + $0x484] ss:$8 sps:$4 sm:$0xff]  }
  0x92   :  { %1411 = vmatmul.mubr.bf16.vlgmr.msra.gmra.mxu1 %v1714_v14  ;;  %1420 = vmatpush1.bf16.msra.mxu0 %v2156_v15  ;;  %v2251_v14 = vld [vmem:[#allocation3 + $0x584] ss:$8 sps:$4 sm:$0xff]   ;;  %v2246_v15 = vld [vmem:[#allocation3 + $0x480] ss:$8 sps:$4 sm:$0xff]  }
  0x93   :  { %1461 = vmatpush1.bf16.msra.mxu1 %v2159_v16  ;;  %1421 = vmatprep.subr.bf16.mxu0 %v2164_v17  ;;  %v2249_v16 = vld [vmem:[#allocation3 + $0x580] ss:$8 sps:$4 sm:$0xff]   ;;  %v1716_v17 = vcombine.low %v2370_v19, %v2370_v19  ;;  %v2259_v19 = vld [vmem:[%s2448_s3 + $0x30] sm:$0xff]  }
  0x94   :  { %1462 = vmatprep.subr.bf16.mxu1 %v2167_v18  ;;  %1451 = vmatprep.mubr.bf16.mxu0 %v1717_v23  ;;  %v1718_v18 = vcombine.low %v2375_v20, %v2375_v20  ;;  %v2258_v23 = vld [vmem:[%s2448_s3 + $0x70] sm:$0xff]   ;;  %v2260_v20 = vld [vmem:[%s2448_s3 + $0x68] sm:$0xff]  }
  0x95   :  { %1492 = vmatprep.mubr.bf16.mxu1 %v1719_v24  ;;  %v2261_v24 = vld [vmem:[%s2448_s3 + $0x28] sm:$0xff]  }
  0x96   :  { %1422 = vmatpush1.bf16.msra.mxu0 %v2162_v21  ;;  %v2256_v21 = vld [vmem:[%s2448_s3 + $0x78] sm:$0xff]  }
  0x97   :  { %1463 = vmatpush1.bf16.msra.mxu1 %v2165_v22  ;;  %1423 = vmatprep.subr.bf16.mxu0 %v2170_v25  ;;  %v2257_v22 = vld [vmem:[%s2448_s3 + $0x38] sm:$0xff]   ;;  %v2262_v25 = vld [vmem:[%s2448_s3 + $0x60] sm:$0xff]  }
  0x98   :  { %1464 = vmatprep.subr.bf16.mxu1 %v2173_v26  ;;  %v2263_v26 = vld [vmem:[%s2448_s3 + $0x20] sm:$0xff]  }
  0x9a   :  { %1424 = vmatpush1.bf16.msra.mxu0 %v2168_v27  ;;  %v2264_v27 = vld [vmem:[%s2448_s3 + $0x58] sm:$0xff]  }
  0x9b   :  { %1465 = vmatpush1.bf16.msra.mxu1 %v2171_v28  ;;  %1425 = vmatprep.subr.bf16.mxu0 %v2176_v29  ;;  %v2265_v28 = vld [vmem:[%s2448_s3 + $0x18] sm:$0xff]   ;;  %v243_v29 = vlaneseq }
  0x9c   :  { %1466 = vmatprep.subr.bf16.mxu1 %v2179_v30 }
  0x9d   :  { %v244_v30 = vshrl.u32 %v243_v29, 7  ;;  %v1930_v29 = vld [vmem:[#allocation2] ss:$0 sm:$0xff] }
  0x9e   :  { %1426 = vmatpush1.bf16.msra.mxu0 %v2174_v31 }
  0x9f   :  { %1467 = vmatpush1.bf16.msra.mxu1 %v2177_v32  ;;  %1427 = vmatprep.subr.bf16.mxu0 %v2182_v33  ;;  %v245_v31 = vsub.s32 0, %v244_v30  ;;  %v241_v32 = vld [vmem:[%s2447_s2] sm:$0x3]  ;;  %v249_v33 = vsub.s32 1, %v244_v30 }
  0xa0   :  { %1468 = vmatprep.subr.bf16.mxu1 %v2185_v34 }
  0xa1   :  { %v246_v34 = vrot.slane %v241_v32, %v245_v31 }
  0xa2   :  { %1428 = vmatpush1.bf16.msra.mxu0 %v2180_v35  ;;  %v2266_v35 = vld [vmem:[%s2448_s3 + $0x50] sm:$0xff]  }
  0xa3   :  { %1469 = vmatpush1.bf16.msra.mxu1 %v2183_v36  ;;  %1429 = vmatprep.subr.bf16.mxu0 %v2188_v37  ;;  %v250_v36 = vrot.slane %v241_v32, %v249_v33  ;;  %v2267_v37 = vld [vmem:[%s2448_s3 + $0x10] sm:$0xff]  }
  0xa4   :  { %1470 = vmatprep.subr.bf16.mxu1 %v2191_v38 }
  0xa6   :  { %1430 = vmatpush1.bf16.msra.mxu0 %v2186_v39 }
  0xa7   :  { %1471 = vmatpush1.bf16.msra.mxu1 %v2189_v40  ;;  %1431 = vmatprep.subr.bf16.mxu0 %v2194_v41 }
  0xa8   :  { %1472 = vmatprep.subr.bf16.mxu1 %v2197_v42 }
  0xaa   :  { %1432 = vmatpush1.bf16.msra.mxu0 %v2192_v43  ;;  %v2268_v43 = vld [vmem:[%s2448_s3 + $0x48] sm:$0xff]  }
  0xab   :  { %1473 = vmatpush1.bf16.msra.mxu1 %v2195_v44  ;;  %1433 = vmatprep.subr.bf16.mxu0 %v2200_v45 }
  0xac   :  { %1474 = vmatprep.subr.bf16.mxu1 %v2203_v46  ;;  %v2269_v46 = vld [vmem:[%s2448_s3 + $0x8] sm:$0xff]  }
  0xae   :  { %1434 = vmatpush1.bf16.msra.mxu0 %v2198_v47 }
  0xaf   :  { %1475 = vmatpush1.bf16.msra.mxu1 %v2201_v48  ;;  %1435 = vmatprep.subr.bf16.mxu0 %v2206_v49 }
  0xb0   :  { %1476 = vmatprep.subr.bf16.mxu1 %v2209_v50 }
  0xb2   :  { %1436 = vmatpush2.bf16.msra.mxu0 %v2204_v51 }
  0xb3   :  { %1477 = vmatpush2.bf16.msra.mxu1 %v2207_v52  ;;  %1437 = vmatprep.subr.bf16.mxu0 %v2212_v53  ;;  %v2270_v52 = vld [vmem:[%s2448_s3 + $0x40] sm:$0xff]  }
  0xb4   :  { %1478 = vmatprep.subr.bf16.mxu1 %v2215_v54  ;;  %v2271_v53 = vld [vmem:[%s2448_s3] sm:$0xff]  }
  0xb6   :  { %1438 = vmatpush2.bf16.msra.mxu0 %v2210_v55 }
  0xb7   :  { %1479 = vmatpush2.bf16.msra.mxu1 %v2213_v56  ;;  %1439 = vmatprep.subr.bf16.mxu0 %v2218_v57 }
  0xb8   :  { %1480 = vmatprep.subr.bf16.mxu1 %v2221_v58 }
  0xba   :  { %1440 = vmatpush2.bf16.msra.mxu0 %v2216_v59 }
  0xbb   :  { %1481 = vmatpush2.bf16.msra.mxu1 %v2219_v60  ;;  %1441 = vmatprep.subr.bf16.mxu0 %v2224_v61 }
  0xbc   :  { %1482 = vmatprep.subr.bf16.mxu1 %v2227_v62 }
  0xbe   :  { %1442 = vmatpush2.bf16.msra.mxu0 %v2222_v63 }
  0xbf   :  { %1483 = vmatpush2.bf16.msra.mxu1 %v2225_v0  ;;  %1443 = vmatprep.subr.bf16.mxu0 %v2230_v1 }
  0xc0   :  { %1484 = vmatprep.subr.bf16.mxu1 %v2233_v2 }
  0xc2   :  { %1444 = vmatpush2.bf16.msra.mxu0 %v2228_v3 }
  0xc3   :  { %1485 = vmatpush2.bf16.msra.mxu1 %v2231_v4  ;;  %1445 = vmatprep.subr.bf16.mxu0 %v2236_v5 }
  0xc4   :  { %1486 = vmatprep.subr.bf16.mxu1 %v2239_v6 }
  0xc6   :  { %1446 = vmatpush2.bf16.msra.mxu0 %v2234_v7 }
  0xc7   :  { %1487 = vmatpush2.bf16.msra.mxu1 %v2237_v8  ;;  %1447 = vmatprep.subr.bf16.mxu0 %v2242_v9 }
  0xc8   :  { %1488 = vmatprep.subr.bf16.mxu1 %v2245_v10 }
  0xca   :  { %1448 = vmatpush2.bf16.msra.mxu0 %v2240_v11 }
  0xcb   :  { %1489 = vmatpush2.bf16.msra.mxu1 %v2243_v12  ;;  %1449 = vmatprep.subr.bf16.mxu0 %v2248_v13 }
  0xcc   :  { %1490 = vmatprep.subr.bf16.mxu1 %v2251_v14 }
  0xce   :  { %1450 = vmatpush2.bf16.msra.mxu0 %v2246_v15 }
  0xcf   :  { %1491 = vmatpush2.bf16.msra.mxu1 %v2249_v16  ;;  %1931 = vmatprep.subr.bf16.mxu0 %v2256_v21  ;;  %v1912_v21 = vld [vmem:[%s2449_s4] ss:$0 sm:$0xff] }
  0xd1   :  { %1452 = vmatmul.mubr.bf16.vlgmr.msra.gmra.mxu0 %v1716_v17 }
  0xd2   :  { %1493 = vmatmul.mubr.bf16.vlgmr.msra.gmra.mxu1 %v1718_v18  ;;  %1932 = vmatpush3.bf16.msra.mxu0 %v2257_v22 }
  0xd3   :  { %1933 = vmatprep.subr.bf16.mxu0 %v2258_v23 }
  0xd6   :  { %1934 = vmatpush3.bf16.msra.mxu0 %v2259_v19 }
  0xd7   :  { %1935 = vmatprep.subr.bf16.mxu0 %v2260_v20 }
  0xda   :  { %1936 = vmatpush3.bf16.msra.mxu0 %v2261_v24 }
  0xdb   :  { %1937 = vmatprep.subr.bf16.mxu0 %v2262_v25  ;;  %v1929_v25 = vld [vmem:[%s2450_s5] ss:$0 sm:$0xff] }
  0xde   :  { %1938 = vmatpush3.bf16.msra.mxu0 %v2263_v26 }
  0xdf   :  { %1939 = vmatprep.subr.bf16.mxu0 %v2264_v27 }
  0xe2   :  { %1940 = vmatpush3.bf16.msra.mxu0 %v2265_v28 }
  0xe3   :  { %1941 = vmatprep.subr.bf16.mxu0 %v2266_v35 }
  0xe6   :  { %1942 = vmatpush3.bf16.msra.mxu0 %v2267_v37 }
  0xe7   :  { %1943 = vmatprep.subr.bf16.mxu0 %v2268_v43 }
  0xea   :  { %1944 = vmatpush3.bf16.msra.mxu0 %v2269_v46 }
  0xeb   :  { %1945 = vmatprep.subr.bf16.mxu0 %v2270_v52 }
  0xee   :  { %1946 = vmatpush3.bf16.msra.mxu0 %v2271_v53 }
 0x111   :  { %v1289_v38 = vpop.f32.mrf.mxu0 }
 0x112   :  { %v1330_v39 = vpop.f32.mrf.mxu1  ;;  %v1290_v40 = vadd.f32 %v1289_v38, %v246_v34 }
 0x113   :  { %v1291_v41 = vpop.f32.mrf.mxu0 }
 0x114   :  { %v1332_v42 = vpop.f32.mrf.mxu1  ;;  %v1331_v44 = vadd.f32 %v1330_v39, %v1290_v40  ;;  %v1292_v45 = vadd.f32 %v1291_v41, %v250_v36 }
 0x115   :  { %v1293_v47 = vpop.f32.mrf.mxu0 }
 0x116   :  { %v1334_v48 = vpop.f32.mrf.mxu1  ;;  %v1333_v49 = vadd.f32 %v1332_v42, %v1292_v45 }
 0x117   :  { %v1294_v50 = vpop.f32.mrf.mxu0 }
 0x118   :  { %v1335_v51 = vpop.f32.mrf.mxu1 }
 0x151   :  { %v1371_v54 = vpop.f32.mrf.mxu0 }
 0x152   :  { %v1412_v55 = vpop.f32.mrf.mxu1  ;;  %v1372_v56 = vadd.f32 %v1371_v54, %v1331_v44 }
 0x153   :  { %v1373_v57 = vpop.f32.mrf.mxu0 }
 0x154   :  { %v1414_v58 = vpop.f32.mrf.mxu1  ;;  %v1413_v59 = vadd.f32 %v1412_v55, %v1372_v56  ;;  %v1374_v0 = vadd.f32 %v1373_v57, %v1333_v49 }
 0x155   :  { %v1375_v60 = vpop.f32.mrf.mxu0 }
 0x156   :  { %v1416_v61 = vpop.f32.mrf.mxu1  ;;  %v1415_v3 = vadd.f32 %v1414_v58, %v1374_v0 }
 0x157   :  { %v1376_v62 = vpop.f32.mrf.mxu0 }
 0x158   :  { %v1417_v63 = vpop.f32.mrf.mxu1 }
 0x191   :  { %v1453_v1 = vpop.f32.mrf.mxu0 }
 0x192   :  { %v1494_v2 = vpop.f32.mrf.mxu1  ;;  %v1454_v4 = vadd.f32 %v1453_v1, %v1413_v59 }
 0x193   :  { %v1455_v5 = vpop.f32.mrf.mxu0 }
 0x194   :  { %v1496_v6 = vpop.f32.mrf.mxu1  ;;  %v1495_v7 = vadd.f32 %v1494_v2, %v1454_v4  ;;  %v1456_v8 = vadd.f32 %v1455_v5, %v1415_v3 }
 0x195   :  { %v1457_v9 = vpop.f32.mrf.mxu0 }
 0x196   :  { %v1498_v10 = vpop.f32.mrf.mxu1  ;;  %v1497_v11 = vadd.f32 %v1496_v6, %v1456_v8  ;;  %v1501_v12 = vmax.f32 %v1495_v7, 0.0 }
 0x197   :  { %v1458_v13 = vpop.f32.mrf.mxu0 }
 0x198   :  { %v1499_v14 = vpop.f32.mrf.mxu1  ;;  %v1502_v15 = vmax.f32 %v1497_v11, 0.0  ;;  %v1503_v17 = vpack.c.bf16 %v1501_v12, %v1501_v12 }
 0x19a   :  { %v1504_v16 = vpack.c.bf16 %v1502_v15, %v1502_v15 }
 0x19c   :  { %1672 = vmatprep.mubr.bf16.mxu0 %v1504_v16 }
 0x19d   :  { %1673 = vmatmul.mubr.bf16.vlgmr.msra.gmra.mxu0 %v1503_v17 }
 0x25d   :  { %v1947_v18 = vpop.f32.mrf.mxu0 }
 0x25f   :  { %v1948_v22 = vpop.f32.mrf.mxu0 }
 0x260   :  { %v1949_v23 = vadd.f32 %v1948_v22, %v1947_v18 }
 0x261   :  { %v1950_v19 = vpop.f32.mrf.mxu0 }
 0x262   :  { %v1675_v20 = vadd.f32 %v1949_v23, %v1912_v21 }
 0x263   :  { %v1951_v24 = vpop.f32.mrf.mxu0 }
 0x264   :  { %v1680_v26 = vmax.f32 %v1675_v20, 0.0 }
 0x266   :  { %v1688_v27 = vmul.f32 %v1929_v25, %v1680_v26 }
 0x268   :  { %v1690_v28 = vsel %vm1689_vm0, %v1688_v27, 0.0 }
 0x269   :  { %1691 = vadd.xlane.f32.xlu0 %v1690_v28 }
 0x2f2   :  { %v1692_v30 = vpop.xlane.xlu0 %1691 }
 0x2f3   :  { %v1700_v31 = vadd.f32 %v1930_v29, %v1692_v30 }
 0x2f5   :  { %1702 = vst.msk [vmem:[%s2452_s7] sm:$0xff] %vm1701_vm1, %v1700_v31 }
 0x2f6   :  { %1707 = vsyncpa [#allocation4], 1 }

</bundles_post_ra>
